<compile_context>
chip_gen: v7x
topology: tpu7x:2x2x1
jax: 0.10.0
libtpu: 0.0.40
codegen_flags: <defaults>
</compile_context>

<pallas_src>
from typing import Dict, Optional

import jax
import jax.numpy as jnp
from jax.experimental import pallas as pl
from jax.experimental.pallas import tpu as pltpu


# ------------------------------- helpers ------------------------------------

def _round_up(x: int, m: int) -> int:
    return ((x + m - 1) // m) * m


_VMEM_BUDGET_BYTES = 24 * 1024 * 1024  # conservative: fits v7x's 32 MiB scoped VMEM


def _choose_batch_tile(b_padded: int, d: int, t_padded: int) -> int:
    """Largest multiple-of-8 batch tile that keeps double-buffered x/out tiles
    plus the resident bf16 weight under the VMEM budget (capped at 1024 rows)."""
    resident = d * t_padded * 2 + t_padded * 4          # bf16 weight + f32 bias
    per_row = 2 * (d * 2 + t_padded * 4)                # 2 bufs x (bf16 x + f32 out)
    tb = max(_VMEM_BUDGET_BYTES - resident, 0) // max(per_row, 1)
    tb = max(8, (tb // 8) * 8)
    return int(min(tb, 1024, b_padded))


# ----------------------------- Pallas kernel --------------------------------

def _predict_head_kernel(x_ref, w_ref, b_ref, o_ref):
    # x_ref: [TB, D]  bf16 (batch tile)
    # w_ref: [D, Tp]  bf16 (resident across all grid steps)
    # b_ref: [1, Tp]  f32  (resident)
    # o_ref: [TB, Tp] f32  (lane-dense: Tp is a multiple of 128)
    logits = jnp.dot(x_ref[...], w_ref[...], preferred_element_type=jnp.float32)
    logits = logits + b_ref[...]                         # broadcast over batch tile
    o_ref[...] = jax.nn.sigmoid(logits).astype(o_ref.dtype)


def predict_head(x: jnp.ndarray, w: jnp.ndarray, b: jnp.ndarray,
                 *, batch_tile: Optional[int] = None,
                 out_dtype=jnp.float32) -> jnp.ndarray:
    """Fused dense + bias + sigmoid, batch-tiled and software-pipelined."""
    B, D = x.shape
    Dw, T = w.shape
    assert D == Dw and b.shape == (1, T)

    # Lane-dense output: pad task dim to a multiple of 128 (zero columns are
    # computed as sigmoid(0)=0.5 and sliced away below).
    Tp = _round_up(T, 128)
    w_p = jnp.zeros((D, Tp), jnp.bfloat16).at[:, :T].set(w.astype(jnp.bfloat16))
    b_p = jnp.zeros((1, Tp), jnp.float32).at[:, :T].set(b.astype(jnp.float32))

    # Batch tiling (multiple of 8 sublanes); pad B so tiles divide evenly.
    Bp8 = _round_up(B, 8)
    TB = batch_tile if batch_tile is not None else _choose_batch_tile(Bp8, D, Tp)
    TB = max(8, _round_up(min(TB, Bp8), 8))
    Bp = _round_up(B, TB)

    x_p = x.astype(jnp.bfloat16)
    if Bp != B:
        x_p = jnp.pad(x_p, ((0, Bp - B), (0, 0)))

    out = pl.pallas_call(
        _predict_head_kernel,
        out_shape=jax.ShapeDtypeStruct((Bp, Tp), out_dtype),
        grid_spec=pl.GridSpec(
            grid=(Bp // TB,),
            in_specs=[
                pl.BlockSpec((TB, D), lambda i: (i, 0)),   # batch-tiled activations
                pl.BlockSpec((D, Tp), lambda i: (0, 0)),   # weight stays resident
                pl.BlockSpec((1, Tp), lambda i: (0, 0)),   # bias stays resident
            ],
            out_specs=pl.BlockSpec((TB, Tp), lambda i: (i, 0)),
        ),
        compiler_params=pltpu.CompilerParams(
            # Independent batch tiles -> shard across v7x's two TensorCores.
            dimension_semantics=("parallel",),
            vmem_limit_bytes=32 * 1024 * 1024,
        ),
    )(x_p, w_p, b_p)

    return out[:B, :T]


# -------------------------- Module-style wrapper -----------------------------

class MultistreamPredictModuleJax:
    """JAX/Pallas analogue of torchrec MultistreamPredictModule.

    forward(batch: Dict[str, Array]) -> Dict[str, Array]
    # TODO(synk): torch.cuda.Stream / torch.inference_mode context managers
    #             have no Pallas/TPU equivalent; they are intentionally omitted.
    """

    def __init__(self, num_features: int, num_tasks: int,
                 batch_tile: Optional[int] = None):
        # Deterministic synthetic parameters (the interface defines no weights).
        kw, kb = jax.random.split(jax.random.PRNGKey(42))
        scale = 1.0 / jnp.sqrt(jnp.float32(num_features))
        # Weight stored in bf16 (MXU operand dtype, halves weight HBM traffic).
        self.weight = (jax.random.normal(kw, (num_features, num_tasks),
                                         jnp.float32) * scale).astype(jnp.bfloat16)
        self.bias = (jax.random.normal(kb, (1, num_tasks), jnp.float32) * 0.01)
        self.batch_tile = batch_tile
        # TODO(synk): if multiple prediction heads exist, pack their weights
        #             into one [D, sum(T_i)] matmul to fill the MXU width.

    def predict_forward(self, batch: Dict[str, jnp.ndarray]) -> Dict[str, jnp.ndarray]:
        x = batch["float_features"]
        return {"default": predict_head(x, self.weight, self.bias,
                                        batch_tile=self.batch_tile)}

    def forward(self, batch: Dict[str, jnp.ndarray]) -> Dict[str, jnp.ndarray]:
        # Stream selection / device guard collapses to a direct call on TPU.
        return self.predict_forward(batch)

    __call__ = forward


# --------------------------------- main --------------------------------------

if __name__ == "__main__":
    B, D, T = 64, 256, 8  # batch, dense-feature dim, prediction tasks

    key = jax.random.PRNGKey(0)
    x = jax.random.normal(key, (B, D), jnp.float32)
    batch = {"float_features": x}

    # Small batch_tile so the test exercises multiple pipelined grid steps.
    module = MultistreamPredictModuleJax(num_features=D, num_tasks=T, batch_tile=16)

    out = module(batch)
    jax.block_until_ready(out["default"])

    # Cross-check against a plain JAX reference on the same bf16-rounded operands.
    x_bf = x.astype(jnp.bfloat16).astype(jnp.float32)
    w_f32 = module.weight.astype(jnp.float32)
    ref = jax.nn.sigmoid(x_bf @ w_f32 + module.bias)

    assert out["default"].shape == (B, T)
    assert out["default"].dtype == jnp.float32
    assert jnp.allclose(out["default"], ref, atol=1e-2, rtol=1e-2)

    print("KERNEL_OK")
</pallas_src>

<mosaic_0001>
module attributes {stable_mosaic.version = 11 : i64} {
  func.func @_predict_head_kernel(%arg0: i32, %arg1: memref<16x256xbf16, #tpu.memory_space<vmem>>, %arg2: memref<256x128xbf16, #tpu.memory_space<vmem>>, %arg3: memref<1x128xf32, #tpu.memory_space<vmem>>, %arg4: memref<16x128xf32, #tpu.memory_space<vmem>>) attributes {dimension_semantics = [#tpu.dimension_semantics<parallel>], iteration_bounds = array<i64: 4>, scalar_prefetch = 0 : i64, scratch_operands = 0 : i64, tpu.core_type = #tpu.core_type<tc>, window_params = [{transform_indices = @transform_0, window_bounds = array<i64: 16, 256>}, {pipeline_mode = #tpu.pipeline_mode<synchronous>, transform_indices = @transform_1, window_bounds = array<i64: 256, 128>}, {pipeline_mode = #tpu.pipeline_mode<synchronous>, transform_indices = @transform_2, window_bounds = array<i64: 1, 128>}, {transform_indices = @transform_3, window_bounds = array<i64: 16, 128>}]} {
    %c0 = arith.constant 0 : index
    %c0_0 = arith.constant 0 : index
    %0 = vector.load %arg1[%c0, %c0_0] : memref<16x256xbf16, #tpu.memory_space<vmem>>, vector<16x256xbf16>
    %c0_1 = arith.constant 0 : index
    %c0_2 = arith.constant 0 : index
    %1 = vector.load %arg2[%c0_1, %c0_2] : memref<256x128xbf16, #tpu.memory_space<vmem>>, vector<256x128xbf16>
    %cst = arith.constant dense<0.000000e+00> : vector<16x128xf32>
    %2 = tpu.matmul %0, %1, %cst {dimension_numbers = #tpu.dot_dimension_numbers<[1], [0], [0], [1], [0, 0, 1, 1], [], []>} : vector<16x256xbf16>, vector<256x128xbf16>, vector<16x128xf32> -> vector<16x128xf32>
    %c0_3 = arith.constant 0 : index
    %c0_4 = arith.constant 0 : index
    %3 = vector.load %arg3[%c0_3, %c0_4] : memref<1x128xf32, #tpu.memory_space<vmem>>, vector<1x128xf32>
    %4 = vector.broadcast %3 : vector<1x128xf32> to vector<16x128xf32>
    %5 = arith.addf %2, %4 : vector<16x128xf32>
    %6 = arith.negf %5 : vector<16x128xf32>
    %7 = math.exp %6 : vector<16x128xf32>
    %cst_5 = arith.constant 1.000000e+00 : f32
    %8 = vector.broadcast %cst_5 : f32 to vector<16x128xf32>
    %9 = arith.addf %8, %7 : vector<16x128xf32>
    %10 = arith.divf %8, %9 : vector<16x128xf32>
    %c0_6 = arith.constant 0 : index
    %c0_7 = arith.constant 0 : index
    %11 = vector.load %arg4[%c0_6, %c0_7] : memref<16x128xf32, #tpu.memory_space<vmem>>, vector<16x128xf32>
    tpu.vector_store %arg4[%c0_6, %c0_7], %10 {strides = array<i32>} : memref<16x128xf32, #tpu.memory_space<vmem>>, vector<16x128xf32>,
    return
  }
  func.func @transform_0(%arg0: i32) -> (i32, i32) {
    %c0_i32 = arith.constant 0 : i32
    %c0_i32_0 = arith.constant 0 : i32
    return %arg0, %c0_i32 : i32, i32
  }
  func.func @transform_1(%arg0: i32) -> (i32, i32) {
    %c0_i32 = arith.constant 0 : i32
    %c0_i32_0 = arith.constant 0 : i32
    %c0_i32_1 = arith.constant 0 : i32
    return %c0_i32, %c0_i32_0 : i32, i32
  }
  func.func @transform_2(%arg0: i32) -> (i32, i32) {
    %c0_i32 = arith.constant 0 : i32
    %c0_i32_0 = arith.constant 0 : i32
    %c0_i32_1 = arith.constant 0 : i32
    return %c0_i32, %c0_i32_0 : i32, i32
  }
  func.func @transform_3(%arg0: i32) -> (i32, i32) {
    %c0_i32 = arith.constant 0 : i32
    %c0_i32_0 = arith.constant 0 : i32
    return %arg0, %c0_i32 : i32, i32
  }
}

</mosaic_0001>

<bundles_post_ra>
// kernel: tpu_custom_call.1
= control target key start
LH: loop header
LB: loop body
LE: loop exit
PB: predicated region body
PF: predicated region fallthrough
CT: control target
= control target key end

     0   :  { %8 = vsyncpa [#allocation3], 0  ;;  %s1022_s0 = inlined_call_operand.hbm [shape: bf16[64,256], index: 0, kind: input, shape index: {}]   ;;  %s1023_s1 = inlined_call_operand.hbm [shape: bf16[256,128], index: 1, kind: input, shape index: {}]   ;;  %s1024_s2 = inlined_call_operand.vmem [shape: f32[1,128], index: 2, kind: input, shape index: {}]   ;;  %s1025_s3 = inlined_call_operand.hbm [shape: f32[64,128], index: 3, kind: output, shape index: {}]  }
   0x1   :  { %10 = vsyncpa [#allocation3 + $0x1], 0 }
   0x2   :  { %11 = vsyncpa [#allocation6], 0 }
   0x3   :  { %12 = vsyncpa [#allocation4], 0 }
   0x4   :  { %14 = vsyncpa [#allocation4 + $0x1], 0  ;;  %s819_s12 = smov 0   ;;  %s821_s13 = smov 0  }
   0x5   :  { %s823_s14 = smov 0   ;;  %s825_s15 = smov 0  }
   0x6 LB: > { %s840_s16 = sadd.s32 4294967295, %s788_s15   ;;  %s507_s17 = sadd.s32 4294967294, %s788_s15   ;;  %s788_s15 = sphi %s825_s15, %s1044_s15   ;;  %s784_s14 = sphi %s823_s14, %s1043_s14   ;;  %s780_s13 = sphi %s821_s13, %s1042_s13   ;;  %s776_s12 = sphi %s819_s12, %s1041_s12  }
   0x7   : > { %p40_p0 = scmp.ne.s32.totalorder %s780_s13, %s776_s12  ;;  %p1026_p1 = scmp.eq.s32.totalorder %s840_s16, 0 }
   0x8   : > { %p112_p3 = scmp.eq.s32.totalorder %s507_s17, 3  ;;  %p508_p5 = scmp.ge.s32.totalorder %s788_s15, 1 }
   0x9   : > { %p849_p4 = por %p1026_p1, %p40_p0  ;;  %p119_p7 = scmp.lt.s32.totalorder %s788_s15, 5 }
   0xa   : > { %p854_p6 = por %p112_p3, %p40_p0  ;;  %s790_s21 = smov [#allocation5]  }
   0xb   : > { %s1029_s18 = scalar_select %p849_p4, 1, 0 }
   0xc   : > { %s1030_s19 = scalar_select %p854_p6, 1, 0 }
   0xd   : > { %p859_p8 = pnand %p508_p5, %p119_p7  ;;  %s131_s22 = sshll.u32 %s790_s21, 4  ;;  %s132_s22 = int_to_ptr.vmem [resolvable:$true] %s131_s22 }
   0xe   : > { %s872_s24 = sadd.s32 1, %s788_s15   ;;  %s27_s25 = sadd.s32 1, %s784_s14 }
   0xf   : > { %s1031_s20 = scalar_select %p859_p8, 1, 0 }
  0x10   : > { %p578_p9 = pneg %p859_p8  ;;  %s24_s26 = ssub.s32 %s788_s15, %s872_s24 }
  0x11   : > { %s660_s29 = scalar_lea.hbm %s1023_s1, 2048 }
  0x12   : > { %p867_p10 = pnand %p578_p9, %p1026_p1  ;;  %p661_p11 = scmp.ne.s32.totalorder %s1023_s1, %s660_s29 }
  0x13   : > { %p667_p3 = scmp.lt.u32.totalorder %s660_s29, %s1023_s1 }
  0x14   : > { %p662_p12 = pneg %p867_p10 }
  0x16   : > { %p663_p13 = pnand %p662_p12, %p661_p11 }
  0x18   : > { %p664_p0 = pneg %p663_p13 }
  0x1a   : > { %p669_p5 = pnand %p667_p3, %p664_p0 }
  0x1c   : > { %672 = shalt.err (!%p669_p5)
}
  0x1d   : > { %s673_s7 = scalar_lea.vmem %s132_s22, 2048  ;;  %p681_p2 = scmp.lt.s32.totalorder %s132_s22, %s132_s22 }
  0x1e   : > { %p674_p7 = scmp.ne.s32.totalorder %s132_s22, %s673_s7  ;;  %p682_p6 = scmp.lt.s32.totalorder %s673_s7, %s673_s7 }
  0x20   : > { %p676_p9 = pnand %p674_p7, %p662_p12  ;;  %p683_p4 = por %p682_p6, %p681_p2 }
  0x22   : > { %p677_p1 = pneg %p676_p9 }
  0x24   : > { %p684_p8 = pnand %p683_p4, %p677_p1 }
  0x26   : > { %687 = shalt.err (!%p684_p8)
}
  0x27   : > { %s791_s8 = smov 64   ;;  %s792_s9 = smov 4  }
  0x28   : > { %581 = dma.hbm_to_vmem [thread:$0]  (!%p867_p10), %s1023_s1, 2048, %s132_s22, [#allocation6], %s791_s8, %s791_s8, %s792_s9  }
  0x29   : > { %p25_p11 = scmp.eq.s32.totalorder %s24_s26, 0  ;;  %p34_p2 = scmp.ne.s32.totalorder %s784_s14, %s780_s13 }
  0x2a   : > { %p35_p1 = scmp.eq.s32.totalorder %s788_s15, 0  ;;  %p591_p4 = scmp.lt.s32.totalorder %s788_s15, 4 }
  0x2b   : > { %s898_s17 = scalar_select %p25_p11, %s784_s14, %s27_s25  }
  0x2c   : > { %p36_p6 = por %p35_p1, %p34_p2  ;;  %p1033_p8 = scmp.eq.s32.totalorder %s840_s16, 3 }
  0x2d   : > { %s148_s27 = sand.u32 1, %s784_s14   ;;  %s546_s28 = sshll.u32 %s788_s15, 8 }
  0x2e   : > { %p902_p12 = por %p1033_p8, %p34_p2  ;;  %s511_s29 = sshll.u32 %s148_s27, 4 }
  0x2f   : > { %s911_s4 = scalar_lea.hbm %s1022_s0, %s546_s28  ;;  %s152_s22 = scalar_lea.vmem [#allocation2], %s511_s29 }
  0x30   : > { %s160_s25 = sshll.u32 %s152_s22, 4  ;;  %p913_p10 = pnand %p591_p4, %p36_p6  ;;  %s917_s25 = int_to_ptr.vmem [resolvable:$true] %s160_s25 }
  0x31   : > { %s919_s5 = scalar_lea.sflag [#allocation3], %s148_s27  ;;  %s688_s6 = scalar_lea.hbm %s911_s4, 256 }
  0x32   : > { %p689_p13 = scmp.ne.s32.totalorder %s911_s4, %s688_s6  ;;  %p690_p0 = pneg %p913_p10 }
  0x33   : > { %s693_s9 = scalar_lea.hbm %s1022_s0, 1024  ;;  %p694_p7 = scmp.lt.u32.totalorder %s911_s4, %s1022_s0 }
  0x34   : > { %p691_p3 = pnand %p690_p0, %p689_p13  ;;  %p695_p9 = scmp.lt.u32.totalorder %s693_s9, %s688_s6 }
  0x35   : > { %p697_p2 = scmp.lt.u32.totalorder %s688_s6, %s911_s4 }
  0x36   : > { %p692_p5 = pneg %p691_p3  ;;  %p696_p11 = por %p695_p9, %p694_p7 }
  0x38   : > { %p698_p1 = por %p697_p2, %p696_p11 }
  0x3a   : > { %p699_p4 = pnand %p698_p1, %p692_p5 }
  0x3c   : > { %702 = shalt.err (!%p699_p4)
}
  0x3d   : > { %s703_s27 = scalar_lea.vmem %s917_s25, 256  ;;  %s793_s28 = smov [#allocation2]  }
  0x3e   : > { %p704_p6 = scmp.ne.s32.totalorder %s917_s25, %s703_s27  ;;  %s708_s29 = sshll.u32 %s793_s28, 4  ;;  %s709_s29 = int_to_ptr.vmem [resolvable:$false] %s708_s29 }
  0x3f   : > { %s710_s23 = scalar_lea.vmem %s709_s29, 512  ;;  %p711_p3 = scmp.lt.s32.totalorder %s917_s25, %s709_s29 }
  0x40   : > { %p706_p8 = pnand %p704_p6, %p690_p0  ;;  %p712_p7 = scmp.lt.s32.totalorder %s710_s23, %s703_s27 }
  0x42   : > { %p707_p13 = pneg %p706_p8  ;;  %p713_p9 = por %p712_p7, %p711_p3 }
  0x44   : > { %p714_p11 = pnand %p713_p9, %p707_p13 }
  0x46   : > { %717 = shalt.err (!%p714_p11)
}
  0x47   : > { %s794_s30 = smov 128   ;;  %s795_s22 = smov 8  }
  0x48   : > { %585 = dma.hbm_to_vmem [thread:$0]  (!%p913_p10), %s911_s4, 256, %s917_s25, %s919_s5, %s794_s30, %s794_s30, %s795_s22  }
  0x49   : > { %p1036_p0 = scmp.ne.s32.totalorder %s1031_s20, 0 }
  0x4a   : > { %s950_s6 = sand.u32 (!%p1036_p0), 1, %s780_s13   ;;  %p1037_p5 = scmp.ne.s32.totalorder (!%p1036_p0), %s1029_s18, 0 }
  0x4b   : > { %172 = sbr.rel (%p1036_p0) target bundleno = 379 (0x17b), region = 32  ;;  %s516_s7 = sshll.u32 (!%p1036_p0), %s950_s6, 4 }
  0x4c   : > { %s175_s8 = scalar_lea.sflag (!%p1036_p0), [#allocation3], %s950_s6  ;;  %s956_s9 = scalar_lea.vmem (!%p1036_p0), [#allocation2], %s516_s7 }
  0x52   : > { %763 = dma.done.wait (%p1037_p5), %s175_s8, 256  }
  0x53   : > { %765 = vsyncadd (%p1037_p5), %s175_s8, 4294967040  ;;  %p1038_p10 = scmp.eq.s32.totalorder %s840_s16, 0 }
  0x55   : > { %767 = dma.done.wait (%p1038_p10), [#allocation6], 2048   ;;  %p1039_p2 = pmov %p1038_p10 }
  0x56   : > { %v633_v0 = vld [vmem:[#allocation5 + $0x40] sm:$0xff]   ;;  %v635_v2 = vld [vmem:[#allocation5 + $0x48] sm:$0xff]   ;;  %v637_v4 = vld [vmem:[#allocation5 + $0x50] sm:$0xff]   ;;  %s547_s4 = sshll.u32 %s840_s16, 8  ;;  %s204_s25 = scalar_lea.vmem [#allocation7], %s516_s7 }
  0x57   : > { %769 = vsyncadd (%p1039_p2), [#allocation6], 4294965248  ;;  %v634_v1 = vld [vmem:[#allocation5] sm:$0xff]   ;;  %548 = vmatprep.subr.bf16.mxu0 %v633_v0  ;;  %v636_v3 = vld [vmem:[#allocation5 + $0x8] sm:$0xff]   ;;  %s424_s26 = sshll.u32 %s204_s25, 4  ;;  %s977_s11 = scalar_lea.hbm %s1025_s3, %s547_s4  ;;  %s979_s26 = int_to_ptr.vmem [resolvable:$true] %s424_s26 }
  0x58   : > { %549 = vmatpush3.bf16.msra.mxu0 %v634_v1  ;;  %v638_v5 = vld [vmem:[#allocation5 + $0x10] sm:$0xff]   ;;  %v639_v6 = vld [vmem:[#allocation5 + $0x58] sm:$0xff]   ;;  %v641_v8 = vld [vmem:[#allocation5 + $0x60] sm:$0xff]   ;;  %s411_s27 = scalar_lea.sflag [#allocation4], %s950_s6  ;;  %s718_s28 = scalar_lea.vmem %s979_s26, 256 }
  0x59   : > { %550 = vmatprep.subr.bf16.mxu0 %v635_v2  ;;  %v640_v7 = vld [vmem:[#allocation5 + $0x18] sm:$0xff]   ;;  %v642_v9 = vld [vmem:[#allocation5 + $0x20] sm:$0xff]   ;;  %v643_v10 = vld [vmem:[#allocation5 + $0x68] sm:$0xff]   ;;  %p719_p1 = scmp.ne.s32.totalorder %s979_s26, %s718_s28  ;;  %s796_s16 = smov [#allocation7]  }
  0x5a   : > { %v651_v11 = vld [vmem:[%s956_s9 + $0x4] ss:$8 sps:$4 sm:$0xff]   ;;  %v649_v17 = vld [vmem:[%s956_s9] ss:$8 sps:$4 sm:$0xff]   ;;  %s722_s29 = sshll.u32 %s796_s16, 4  ;;  %s723_s29 = int_to_ptr.vmem [resolvable:$false] %s722_s29 }
  0x5b   : > { %v644_v12 = vld [vmem:[#allocation5 + $0x28] sm:$0xff]   ;;  %387 = vmatprep.mubr.bf16.mxu0 %v651_v11  ;;  %v645_v13 = vld [vmem:[#allocation5 + $0x70] sm:$0xff]   ;;  %v647_v15 = vld [vmem:[#allocation5 + $0x78] sm:$0xff]   ;;  %p720_p4 = pnand %p719_p1, %p902_p12  ;;  %s724_s23 = scalar_lea.vmem %s723_s29, 512 }
  0x5c   : > { %551 = vmatpush3.bf16.msra.mxu0 %v636_v3  ;;  %v646_v14 = vld [vmem:[#allocation5 + $0x30] sm:$0xff]   ;;  %v648_v16 = vld [vmem:[#allocation5 + $0x38] sm:$0xff]   ;;  %v519_v19 = vld [vmem:[%s1024_s2] ss:$0 sm:$0xff]  ;;  %p725_p8 = scmp.lt.s32.totalorder %s979_s26, %s723_s29  ;;  %p726_p13 = scmp.lt.s32.totalorder %s724_s23, %s718_s28 }
  0x5d   : > { %552 = vmatprep.subr.bf16.mxu0 %v637_v4  ;;  %p721_p6 = pneg %p720_p4 }
  0x5e   : > { %p727_p3 = por %p726_p13, %p725_p8 }
  0x60   : > { %553 = vmatpush3.bf16.msra.mxu0 %v638_v5  ;;  %p728_p7 = pnand %p727_p3, %p721_p6 }
  0x61   : > { %554 = vmatprep.subr.bf16.mxu0 %v639_v6 }
  0x64   : > { %555 = vmatpush3.bf16.msra.mxu0 %v640_v7 }
  0x65   : > { %556 = vmatprep.subr.bf16.mxu0 %v641_v8 }
  0x68   : > { %557 = vmatpush3.bf16.msra.mxu0 %v642_v9 }
  0x69   : > { %558 = vmatprep.subr.bf16.mxu0 %v643_v10 }
  0x6c   : > { %559 = vmatpush3.bf16.msra.mxu0 %v644_v12 }
  0x6d   : > { %560 = vmatprep.subr.bf16.mxu0 %v645_v13 }
  0x70   : > { %561 = vmatpush3.bf16.msra.mxu0 %v646_v14 }
  0x71   : > { %562 = vmatprep.subr.bf16.mxu0 %v647_v15 }
  0x74   : > { %563 = vmatpush3.bf16.msra.mxu0 %v648_v16 }
  0x77   : > { %388 = vmatmul.mubr.bf16.vlgmr.msra.gmra.mrb[0].mxu0 %v649_v17 }
 0x14a   : > { %v564_v18 = vpop.f32.mrb[0].mxu0 }
 0x14b   : > { %v565_v20 = vpop.f32.mrb[1].mxu0 }
 0x14c   : > { %v566_v21 = vadd.f32 %v565_v20, %v564_v18  ;;  %v567_v22 = vpop.f32.mrb[2].mxu0 }
 0x14d   : > { %v568_v23 = vpop.f32.mrb[3].mxu0 }
 0x14e   : > { %v390_v24 = vadd.f32 %v566_v21, %v519_v19  ;;  %v569_v25 = vadd.f32 %v568_v23, %v567_v22 }
 0x150   : > { %v538_v26 = vmul.f32 -1.442695, %v390_v24  ;;  %v393_v27 = vadd.f32 %v569_v25, %v519_v19 }
 0x152   : > { %652 = vpow2.f32 %v538_v26  ;;  %v539_v28 = vmul.f32 -1.442695, %v393_v27 }
 0x154   : > { %654 = vpow2.f32 %v539_v28 }
 0x15c   : > { %v653_v29 = vpop.eup %652 }
 0x15d   : > { %v402_v30 = vadd.f32 1.0, %v653_v29 }
 0x15e   : > { %v655_v31 = vpop.eup %654 }
 0x15f   : > { %656 = vrcp.f32 %v402_v30  ;;  %v403_v32 = vadd.f32 1.0, %v655_v31 }
 0x161   : > { %658 = vrcp.f32 %v403_v32 }
 0x169   : > { %v657_v33 = vpop.eup %656 }
 0x16a   : > { %408 = vst [vmem:[%s204_s25] sm:$0xff] %v657_v33 }
 0x16b   : > { %v659_v34 = vpop.eup %658 }
 0x16c   : > { %409 = vst [vmem:[%s204_s25 + $0x8] sm:$0xff] %v659_v34 }
 0x16d   : > { %731 = shalt.err (!%p728_p7)
}
 0x16e   : > { %s732_s30 = scalar_lea.hbm %s977_s11, 256  ;;  %s736_s8 = scalar_lea.hbm %s1025_s3, 1024 }
 0x16f   : > { %p733_p9 = scmp.ne.s32.totalorder %s977_s11, %s732_s30  ;;  %p737_p5 = scmp.lt.u32.totalorder %s977_s11, %s1025_s3 }
 0x170   : > { %p738_p10 = scmp.lt.u32.totalorder %s736_s8, %s732_s30  ;;  %p740_p1 = scmp.lt.u32.totalorder %s732_s30, %s977_s11 }
 0x171   : > { %p734_p11 = pnand %p733_p9, %p902_p12 }
 0x172   : > { %p739_p2 = por %p738_p10, %p737_p5 }
 0x173   : > { %p735_p0 = pneg %p734_p11 }
 0x174   : > { %p741_p4 = por %p740_p1, %p739_p2 }
 0x176   : > { %p742_p6 = pnand %p741_p4, %p735_p0 }
 0x178   : > { %745 = shalt.err (!%p742_p6)
}
 0x179   : > { %s797_s20 = smov 128   ;;  %s798_s4 = smov 8  }
 0x17a   : > { %576 = dma.vmem_to_hbm [thread:$0]  (%p902_p12), %s979_s26, 256, %s977_s11, %s411_s27, %s797_s20, %s797_s20, %s798_s4  }
 0x17b PF: > { %p593_p8 = scmp.ge.s32.totalorder %s788_s15, 2  ;;  %s439_s25 = sand.u32 1, %s776_s12  }
 0x17c   : > { %p1040_p13 = scmp.ne.s32.totalorder %s1030_s19, 0  ;;  %s440_s5 = scalar_lea.sflag [#allocation4], %s439_s25 }
 0x17e   : > { %p587_p3 = pnand %p593_p8, %p1040_p13 }
 0x180   : > { %771 = dma.done.wait (!%p587_p3), %s440_s5, 256  }
 0x181   : > { %773 = vsyncadd (!%p587_p3), %s440_s5, 4294967040  ;;  %p17_p7 = scmp.ge.s32.totalorder %s872_s24, 6   ;;  %s1041_s12 = smov %s780_s13 }
 0x182   : > { %s1042_s13 = smov %s784_s14  ;;  %s1043_s14 = smov %s898_s17 }
 0x183   : > { %s1044_s15 = smov %s872_s24  ;;  %19 = sbr.rel (!%p17_p7) target bundleno = 6 (0x6), region = 81 }
 0x18a   :  { %445 = vsyncpa [#allocation3], 1 }
 0x18b   :  { %447 = vsyncpa [#allocation3 + $0x1], 1 }
 0x18c   :  { %448 = vsyncpa [#allocation6], 1 }
 0x18d   :  { %449 = vsyncpa [#allocation4], 1 }
 0x18e   :  { %451 = vsyncpa [#allocation4 + $0x1], 1 }

</bundles_post_ra>
